<compile_context>
chip_gen: v5e
topology: v5e:2x2
jax: 0.10.0
libtpu: 0.0.40
codegen_flags: <defaults>
</compile_context>

<pallas_src>
import functools

import jax
import jax.numpy as jnp
from jax import lax
from jax.experimental import pallas as pl
from jax.experimental.pallas import tpu as pltpu

_LANES = 128
_NUM_CORE_SPLITS = 2                     # leading "parallel" axis (v7x megacore)
_TARGET_BLOCK_BYTES = 4 * 1024 * 1024    # ~4 MiB VMEM per pipeline buffer


def _round_up(x, m):
    return (x + m - 1) // m * m


def _sumsq_kernel(x_ref, o_ref, *, n_rows, tile_rows, acc_rows,
                  blocks_per_core, needs_mask):
    """Accumulate sum(x^2) of this core's row-chunks into its resident block."""
    c = pl.program_id(0)          # core split (parallel axis)
    i = pl.program_id(1)          # chunk within this core's schedule (arbitrary axis)

    @pl.when(i == 0)
    def _():
        o_ref[...] = jnp.zeros_like(o_ref)

    x = x_ref[...].astype(jnp.float32)   # upcast in-register only
    x2 = x * x

    if needs_mask:
        # Logical (un-clamped) chunk id: rows past n_rows (ragged tail, or the
        # duplicated clamped chunk when the chunk count is odd) contribute zero.
        blk = c * blocks_per_core + i
        row0 = blk * tile_rows
        rows = lax.broadcasted_iota(jnp.int32, (tile_rows, 1), 0) + row0
        x2 = jnp.where(rows < n_rows, x2, 0.0)

    # Fold (tile_rows, D) -> (acc_rows, D): acc_rows independent add chains
    # (acc_rows is a multiple of 8, or equals tile_rows for tiny tables).
    d = x2.shape[-1]
    partial = jnp.sum(x2.reshape(-1, acc_rows, d), axis=0)
    o_ref[...] += partial[None]


def _table_sum_sq(x2d):
    """Sum of squares of one 2-D table, streamed directly from HBM."""
    n_rows, d = x2d.shape
    itemsize = x2d.dtype.itemsize

    # VMEM footprint per row includes lane padding of the minor dim to 128.
    padded_row_bytes = _round_up(d, _LANES) * itemsize
    tile_cap = max(32, (_TARGET_BLOCK_BYTES // padded_row_bytes) // 32 * 32)
    if n_rows >= 32:
        tile_rows = min(tile_cap, (n_rows // 32) * 32)   # always a multiple of 32
    else:
        tile_rows = n_rows                               # single full-dim block

    nblocks = pl.cdiv(n_rows, tile_rows)
    blocks_per_core = pl.cdiv(nblocks, _NUM_CORE_SPLITS)

    acc_rows = tile_rows
    for a in (32, 16, 8):
        if tile_rows % a == 0:
            acc_rows = a
            break

    needs_mask = (n_rows % tile_rows != 0) or (
        blocks_per_core * _NUM_CORE_SPLITS != nblocks)

    kernel = functools.partial(
        _sumsq_kernel,
        n_rows=n_rows, tile_rows=tile_rows, acc_rows=acc_rows,
        blocks_per_core=blocks_per_core, needs_mask=needs_mask)

    def x_index_map(c, i):
        # Clamp so the DMA window never starts past the array end; the kernel's
        # row mask zeroes out any re-read (duplicated) chunk.
        blk = jnp.minimum(c * blocks_per_core + i, nblocks - 1)
        return (blk, 0)

    partials = pl.pallas_call(
        kernel,
        out_shape=jax.ShapeDtypeStruct(
            (_NUM_CORE_SPLITS, acc_rows, d), jnp.float32),
        grid=(_NUM_CORE_SPLITS, blocks_per_core),
        in_specs=[pl.BlockSpec((tile_rows, d), x_index_map)],
        out_specs=pl.BlockSpec((1, acc_rows, d), lambda c, i: (c, 0, 0)),
        compiler_params=pltpu.CompilerParams(
            dimension_semantics=("parallel", "arbitrary")),
        cost_estimate=pl.CostEstimate(
            flops=2 * x2d.size,
            transcendentals=0,
            bytes_accessed=x2d.size * itemsize
            + _NUM_CORE_SPLITS * acc_rows * d * 4),
    )(x2d)

    # Tiny finalize: fold the (2, acc_rows, d) per-core partials to a scalar.
    return jnp.sum(partials)


def emb_loss(*embeddings, norm: int = 2) -> jax.Array:
    """Pallas equivalent of EmbLoss.forward (p=2)."""
    # TODO(synk): only p=2 (the module default) is implemented in-kernel; a
    # general p-norm would need |x|^p accumulation + a p-th-root finalize.
    assert norm == 2

    norms = []
    for emb in embeddings:
        x = jnp.asarray(emb)          # keep native dtype in HBM (no upcast copy)
        if x.size % _LANES == 0:
            # Layout-preserving (copy-free) lane-dense view.
            x2d = x.reshape(-1, _LANES)
        elif x.ndim >= 2:
            x2d = x.reshape(-1, x.shape[-1])
        else:
            x2d = x.reshape(1, -1)
        norms.append(jnp.sqrt(_table_sum_sq(x2d)))

    total = jnp.sum(jnp.stack(norms)) / embeddings[-1].shape[0]
    return total.reshape(1)


if __name__ == "__main__":
    key = jax.random.PRNGKey(0)
    k_user, k_item, k_txt = jax.random.split(key, 3)

    # Small, deterministic example embedding tables (e.g. BM3 user/item/feature
    # embeddings); one bf16 table exercises the native-dtype path.
    user_emb = jax.random.normal(k_user, (64, 32), dtype=jnp.float32)
    item_emb = jax.random.normal(k_item, (48, 32), dtype=jnp.float32)
    txt_emb = jax.random.normal(k_txt, (32, 64), dtype=jnp.bfloat16)

    loss = emb_loss(user_emb, item_emb, txt_emb)
    loss = jax.block_until_ready(loss)

    # Reference check in plain JAX (same math as torch.norm(p=2) per table).
    ref = (jnp.linalg.norm(user_emb)
           + jnp.linalg.norm(item_emb)
           + jnp.linalg.norm(txt_emb.astype(jnp.float32))) / txt_emb.shape[0]
    assert loss.shape == (1,)
    assert jnp.allclose(loss[0], ref, rtol=1e-4, atol=1e-5), (loss, ref)

    print("KERNEL_OK")
</pallas_src>

<mosaic_0001>
module attributes {stable_mosaic.version = 11 : i64} {
  func.func @_sumsq_kernel(%arg0: i32, %arg1: i32, %arg2: memref<16x128xf32, #tpu.memory_space<vmem>>, %arg3: memref<1x16x128xf32, #tpu.memory_space<vmem>>) attributes {dimension_semantics = [#tpu.dimension_semantics<parallel>, #tpu.dimension_semantics<arbitrary>], iteration_bounds = array<i64: 2, 1>, scalar_prefetch = 0 : i64, scratch_operands = 0 : i64, tpu.core_type = #tpu.core_type<tc>, window_params = [{transform_indices = @transform_0, window_bounds = array<i64: 16, 128>}, {transform_indices = @transform_1, window_bounds = array<i64: 1, 16, 128>}]} {
    %c0_i32 = arith.constant 0 : i32
    %0 = arith.cmpi eq, %arg1, %c0_i32 : i32
    %1 = arith.extui %0 : i1 to i32
    %c0_i32_0 = arith.constant 0 : i32
    %2 = arith.cmpi ne, %1, %c0_i32_0 : i32
    scf.if %2 {
      %cst_10 = arith.constant 0.000000e+00 : f32
      %23 = vector.broadcast %cst_10 : f32 to vector<1x16x128xf32>
      %c0_11 = arith.constant 0 : index
      %c0_12 = arith.constant 0 : index
      %c0_13 = arith.constant 0 : index
      %24 = vector.load %arg3[%c0_11, %c0_12, %c0_13] : memref<1x16x128xf32, #tpu.memory_space<vmem>>, vector<1x16x128xf32>
      tpu.vector_store %arg3[%c0_11, %c0_12, %c0_13], %23 {strides = array<i32>} : memref<1x16x128xf32, #tpu.memory_space<vmem>>, vector<1x16x128xf32>,
    } else {
    }
    %c0 = arith.constant 0 : index
    %c0_1 = arith.constant 0 : index
    %3 = vector.load %arg2[%c0, %c0_1] : memref<16x128xf32, #tpu.memory_space<vmem>>, vector<16x128xf32>
    %4 = arith.mulf %3, %3 : vector<16x128xf32>
    %c1_i32 = arith.constant 1 : i32
    %5 = arith.muli %arg0, %c1_i32 : i32
    %6 = arith.addi %5, %arg1 : i32
    %c16_i32 = arith.constant 16 : i32
    %7 = arith.muli %6, %c16_i32 : i32
    %8 = tpu.iota {dimensions = array<i32: 0>} : vector<16x1xi32>
    %9 = vector.broadcast %7 : i32 to vector<16x1xi32>
    %10 = arith.addi %8, %9 : vector<16x1xi32>
    %c16_i32_2 = arith.constant 16 : i32
    %11 = vector.broadcast %c16_i32_2 : i32 to vector<16x1xi32>
    %12 = arith.cmpi slt, %10, %11 : vector<16x1xi32>
    %cst = arith.constant 0.000000e+00 : f32
    %13 = vector.shape_cast %12 : vector<16x1xi1> to vector<16x1xi1>
    %14 = vector.broadcast %13 : vector<16x1xi1> to vector<16x128xi1>
    %15 = vector.broadcast %cst : f32 to vector<16x128xf32>
    %16 = arith.select %14, %4, %15 : vector<16x128xi1>, vector<16x128xf32>
    %17 = vector.shape_cast %16 : vector<16x128xf32> to vector<1x16x128xf32>
    %cst_3 = arith.constant dense<0.000000e+00> : vector<16x128xf32>
    %18 = vector.multi_reduction <add>, %17, %cst_3 [0] : vector<1x16x128xf32> to vector<16x128xf32>
    %c0_4 = arith.constant 0 : index
    %c0_5 = arith.constant 0 : index
    %c0_6 = arith.constant 0 : index
    %19 = vector.load %arg3[%c0_4, %c0_5, %c0_6] : memref<1x16x128xf32, #tpu.memory_space<vmem>>, vector<1x16x128xf32>
    %20 = vector.shape_cast %18 : vector<16x128xf32> to vector<1x16x128xf32>
    %21 = arith.addf %19, %20 : vector<1x16x128xf32>
    %c0_7 = arith.constant 0 : index
    %c0_8 = arith.constant 0 : index
    %c0_9 = arith.constant 0 : index
    %22 = vector.load %arg3[%c0_7, %c0_8, %c0_9] : memref<1x16x128xf32, #tpu.memory_space<vmem>>, vector<1x16x128xf32>
    tpu.vector_store %arg3[%c0_7, %c0_8, %c0_9], %21 {strides = array<i32>} : memref<1x16x128xf32, #tpu.memory_space<vmem>>, vector<1x16x128xf32>,
    return
  }
  func.func @transform_0(%arg0: i32, %arg1: i32) -> (i32, i32) {
    %c1_i32 = arith.constant 1 : i32
    %0 = arith.muli %arg0, %c1_i32 : i32
    %1 = arith.addi %0, %arg1 : i32
    %c0_i32 = arith.constant 0 : i32
    %2 = arith.minsi %1, %c0_i32 : i32
    %c0_i32_0 = arith.constant 0 : i32
    %c0_i32_1 = arith.constant 0 : i32
    return %2, %c0_i32_0 : i32, i32
  }
  func.func @transform_1(%arg0: i32, %arg1: i32) -> (i32, i32, i32) {
    %c0_i32 = arith.constant 0 : i32
    %c0_i32_0 = arith.constant 0 : i32
    %c0_i32_1 = arith.constant 0 : i32
    return %arg0, %c0_i32, %c0_i32_0 : i32, i32, i32
  }
}

</mosaic_0001>

<bundles_post_ra>
// kernel: tpu_custom_call.1
= control target key start
LH: loop header
LB: loop body
LE: loop exit
PB: predicated region body
PF: predicated region fallthrough
CT: control target
= control target key end

     0   :  { %6 = vsyncpa [#allocation3], 0  ;;  %s696_s0 = inlined_call_operand.hbm [shape: f32[16,128], index: 0, kind: input, shape index: {}]   ;;  %s697_s1 = inlined_call_operand.hbm [shape: f32[2,16,128], index: 1, kind: output, shape index: {}]  }
   0x1   :  { %8 = vsyncpa [#allocation3 + $0x1], 0 }
   0x2   :  { %9 = vsyncpa [#allocation4], 0 }
   0x3   :  { %11 = vsyncpa [#allocation4 + $0x1], 0  ;;  %s552_s6 = smov 0   ;;  %s554_s7 = smov 0  }
   0x4   :  { %s556_s8 = smov 0   ;;  %s558_s9 = smov 0  }
   0x5   :  { %s560_s10 = smov 0   ;;  %s562_s11 = smov 0  }
   0x6   :  { %s564_s12 = smov 0   ;;  %s566_s13 = smov 0  }
   0x7 LB: > { %s293_s14 = sadd.s32 4294967295, %s535_s13   ;;  %s294_s15 = sadd.s32 4294967294, %s535_s13   ;;  %s535_s13 = sphi %s566_s13, %s17_s13   ;;  %s531_s12 = sphi %s564_s12, %s708_s12   ;;  %s527_s11 = sphi %s562_s11, %s707_s11   ;;  %s523_s10 = sphi %s560_s10, %s686_s10   ;;  %s519_s9 = sphi %s558_s9, %s706_s9   ;;  %s515_s8 = sphi %s556_s8, %s705_s8   ;;  %s511_s7 = sphi %s554_s7, %s704_s7   ;;  %s507_s6 = sphi %s552_s6, %s703_s6  }
   0x8   : > { %s29_s16 = sadd.s32 1, %s531_s12  ;;  %p504_p1 = scmp.ne.s32.totalorder %s523_s10, 0 }
   0x9   : > { %p31_p0 = scmp.ge.s32.totalorder %s29_s16, 2  ;;  %p50_p2 = scmp.eq.s32.totalorder %s535_s13, 0 }
   0xa   : > { %p55_p3 = scmp.ne.s32.totalorder %s523_s10, %s519_s9  ;;  %p56_p5 = scmp.eq.s32.totalorder %s293_s14, 0 }
   0xb   : > { %s710_s16 = smov (%p31_p0, %s29_s16), 0  ;;  %p598_p4 = por %p504_p1, %p50_p2 }
   0xc   : > { %p602_p6 = por %p56_p5, %p55_p3  ;;  %s65_s19 = ssub.s32 %s531_s12, %s710_s16 }
   0xd   : > { %p66_p7 = scmp.eq.s32.totalorder %s65_s19, 0  ;;  %s68_s20 = sadd.s32 1, %s515_s8 }
   0xe   : > { %p78_p8 = scmp.ne.s32.totalorder %s515_s8, %s511_s7  ;;  %p79_p9 = scmp.eq.s32.totalorder %s293_s14, 1 }
   0xf   : > { %s610_s21 = scalar_select %p66_p7, %s515_s8, %s68_s20  }
  0x10   : > { %p84_p10 = scmp.ne.s32.totalorder %s511_s7, %s507_s6  ;;  %p85_p11 = scmp.eq.s32.totalorder %s294_s15, 1 }
  0x11   : > { %p616_p12 = por %p79_p9, %p78_p8  ;;  %p296_p13 = scmp.ge.s32.totalorder %s535_s13, 2 }
  0x12   : > { %p621_p0 = por %p85_p11, %p84_p10  ;;  %p323_p1 = scmp.lt.s32.totalorder %s535_s13, 2 }
  0x13   : > { %s118_s26 = sshll.u32 %s696_s0, 4  ;;  %s537_s27 = smov [#allocation2]   ;;  %s119_s26 = int_to_ptr.hbm [resolvable:$true] %s118_s26 }
  0x14   : > { %s120_s28 = sshll.u32 %s537_s27, 4  ;;  %p631_p2 = pnand %p323_p1, %p598_p4  ;;  %s121_s28 = int_to_ptr.vmem [resolvable:$true] %s120_s28 }
  0x15   : > { %p300_p3 = scmp.ge.s32.totalorder %s535_s13, 1  ;;  %p128_p5 = scmp.lt.s32.totalorder %s535_s13, 3 }
  0x16   : > { %s402_s30 = sshra.s32 %s119_s26, 4  ;;  %p406_p8 = pneg %p631_p2  ;;  %s403_s30 = int_to_ptr.hbm [resolvable:$true] %s402_s30 }
  0x17   : > { %s404_s2 = scalar_lea.hbm %s403_s30, 16  ;;  %s409_s5 = scalar_lea.hbm %s696_s0, 16 }
  0x18   : > { %p405_p7 = scmp.ne.s32.totalorder %s403_s30, %s404_s2  ;;  %p411_p11 = scmp.lt.s32.totalorder %s409_s5, %s404_s2 }
  0x1a   : > { %p407_p9 = pnand %p406_p8, %p405_p7 }
  0x1c   : > { %p408_p10 = pneg %p407_p9 }
  0x1e   : > { %p413_p4 = pnand %p411_p11, %p408_p10 }
  0x20   : > { %416 = shalt.err (!%p413_p4)
}
  0x21   : > { %s538_s9 = smov 128   ;;  %s539_s14 = smov 8  }
  0x22   : > { %318 = dma.hbm_to_vmem [thread:$0]  (!%p631_p2), %s119_s26, 256, %s121_s28, [#allocation3], %s538_s9, %s538_s9, %s539_s14  }
  0x23   : > { %p129_p1 = pnand %p300_p3, %p128_p5 }
  0x24   : > { %s134_s15 = sand.u32 (!%p129_p1), 1, %s523_s10  }
  0x25   : > { %132 = sbr.rel (%p129_p1) target bundleno = 60 (0x3c), region = 24  ;;  %s301_s17 = sshll.u32 (!%p129_p1), %s134_s15, 4 }
  0x26   : > { %s135_s19 = scalar_lea.sflag (!%p129_p1), [#allocation3], %s134_s15  ;;  %s138_s20 = scalar_lea.vmem (!%p129_p1), [#allocation2], %s301_s17 }
  0x2a   : > { %497 = dma.done.wait (%p602_p6), %s135_s19, 256  }
  0x2b   : > { %499 = vsyncadd (%p602_p6), %s135_s19, 4294967040  ;;  %s155_s24 = sand.u32 1, %s511_s7   ;;  %s303_s25 = sshll.u32 %s527_s11, 4  ;;  %v174_v0 = vlaneseq  ;;  %v168_v6 = vld [vmem:[%s138_s20] sm:$0xff]  ;;  %v169_v7 = vld [vmem:[%s138_s20 + $0x8] sm:$0xff] }
  0x2c   : > { %v177_v1 = vstv %s303_s25  ;;  %s302_s26 = sshll.u32 %s155_s24, 4  ;;  %s208_s29 = scalar_lea.hbm %s697_s1, %s303_s25  ;;  %v170_v8 = vmul.f32 %v168_v6, %v168_v6  ;;  %v171_v9 = vmul.f32 %v169_v7, %v169_v7 }
  0x2d   : > { %v175_v2 = vshrl.u32 %v174_v0, 7  ;;  %s211_s18 = sshll.u32 %s208_s29, 4  ;;  %s157_s11 = scalar_lea.vmem [#allocation5], %s302_s26  ;;  %s212_s18 = int_to_ptr.hbm [resolvable:$true] %s211_s18 }
  0x2e   : > { %s209_s30 = sshll.u32 %s157_s11, 4  ;;  %s197_s2 = scalar_lea.sflag [#allocation4], %s155_s24  ;;  %s210_s30 = int_to_ptr.vmem [resolvable:$true] %s209_s30 }
  0x2f   : > { %v178_v3 = vadd.s32 %v177_v1, %v175_v2  ;;  %v176_v4 = vadd.s32 8, %v175_v2  ;;  %s446_s3 = sshra.s32 %s212_s18, 4  ;;  %s452_s14 = scalar_lea.hbm %s697_s1, 32  ;;  %s447_s3 = int_to_ptr.hbm [resolvable:$true] %s446_s3 }
  0x30   : > { %s448_s4 = scalar_lea.hbm %s447_s3, 16  ;;  %p453_p5 = scmp.lt.s32.totalorder %s447_s3, %s697_s1 }
  0x31   : > { %v179_v5 = vadd.s32 %v177_v1, %v176_v4  ;;  %vm180_vm0 = vcmp.lt.s32.totalorder %v178_v3, 16  ;;  %p449_p6 = scmp.ne.s32.totalorder %s447_s3, %s448_s4  ;;  %p454_p7 = scmp.lt.s32.totalorder %s452_s14, %s448_s4 }
  0x32   : > { %v186_v10 = vsel %vm180_vm0, %v170_v8, 0.0 }
  0x33   : > { %vm181_vm1 = vcmp.lt.s32.totalorder %v179_v5, 16  ;;  %194 = vst [vmem:[%s157_s11] sm:$0xff] %v186_v10  ;;  %p450_p2 = pnand %p449_p6, %p616_p12  ;;  %p455_p8 = por %p454_p7, %p453_p5 }
  0x34   : > { %v187_v11 = vsel %vm181_vm1, %v171_v9, 0.0 }
  0x35   : > { %195 = vst [vmem:[%s157_s11 + $0x8] sm:$0xff] %v187_v11  ;;  %p451_p3 = pneg %p450_p2 }
  0x37   : > { %p456_p9 = pnand %p455_p8, %p451_p3 }
  0x39   : > { %459 = shalt.err (!%p456_p9)
}
  0x3a   : > { %s540_s19 = smov 128   ;;  %s541_s20 = smov 8  }
  0x3b   : > { %313 = dma.vmem_to_hbm [thread:$0]  (%p616_p12), %s210_s30, 256, %s212_s18, %s197_s2, %s540_s19, %s540_s19, %s541_s20  }
  0x3c PF: > { %s226_s24 = sand.u32 1, %s507_s6   ;;  %p320_p10 = pnand %p296_p13, %p621_p0 }
  0x3d   : > { %s227_s25 = scalar_lea.sflag [#allocation4], %s226_s24 }
  0x3e   : > { %p321_p11 = pneg %p320_p10 }
  0x40   : > { %501 = dma.done.wait (%p321_p11), %s227_s25, 256  }
  0x41   : > { %503 = vsyncadd (%p321_p11), %s227_s25, 4294967040  ;;  %s17_s13 = sadd.s32 1, %s535_s13   ;;  %s703_s6 = smov %s511_s7 }
  0x42   : > { %p14_p4 = scmp.ge.s32.totalorder %s17_s13, 4   ;;  %s704_s7 = smov %s515_s8 }
  0x43   : > { %s705_s8 = smov %s610_s21  ;;  %s706_s9 = smov %s523_s10 }
  0x44   : > { %s686_s10 = smov 0   ;;  %s707_s11 = smov %s531_s12 }
  0x45   : > { %s708_s12 = smov %s710_s16  ;;  %16 = sbr.rel (!%p14_p4) target bundleno = 7 (0x7), region = 73 }
  0x4a   :  { %233 = vsyncpa [#allocation3], 1 }
  0x4b   :  { %235 = vsyncpa [#allocation3 + $0x1], 1 }
  0x4c   :  { %236 = vsyncpa [#allocation4], 1 }
  0x4d   :  { %238 = vsyncpa [#allocation4 + $0x1], 1 }

</bundles_post_ra>
